<compile_context>
chip_gen: v5e
topology: v5e:2x2
jax: 0.10.0
libtpu: 0.0.40
codegen_flags: <defaults>
</compile_context>

<pallas_src>
import functools

import jax
import jax.numpy as jnp
from jax.experimental import pallas as pl
from jax.experimental.pallas import tpu as pltpu


# ----------------------------------------------------------------------------
# Kernels
# ----------------------------------------------------------------------------
def _fused_kernel(xh_ref, xl_ref, fc1h_ref, fc1l_ref, fc2h_ref, fc2l_ref,
                  wh_ref, wl_ref, b_ref, o_ref, *, compute_dtype):
    """One batch fully resident: GAP -> MLP -> sigmoid -> gated conv -> ReLU.

    xh_ref: (C_high, HW)   xl_ref: (C_low, HW)
    fc1h/fc1l: (Cr, C_high)/(Cr, C_low)   fc2h/fc2l: (C_high, Cr)/(C_low, Cr)
    wh/wl:    (Cout, C_high)/(Cout, C_low)   b_ref: (Cout, 1)
    o_ref:    (Cout, HW)
    """
    xh = xh_ref[...].astype(jnp.float32)
    xl = xl_ref[...].astype(jnp.float32)

    # Global average pool over the spatial (lane) axis -> column vectors.
    gh = jnp.mean(xh, axis=1, keepdims=True)                 # (C_high, 1)
    gl = jnp.mean(xl, axis=1, keepdims=True)                 # (C_low, 1)

    # Tiny SE MLP in f32 (fc1 split over high/low columns avoids a concat).
    y = jnp.dot(fc1h_ref[...], gh, preferred_element_type=jnp.float32)
    y = y + jnp.dot(fc1l_ref[...], gl, preferred_element_type=jnp.float32)
    y = jnp.maximum(y, 0.0)                                  # (Cr, 1)
    sh = jax.nn.sigmoid(
        jnp.dot(fc2h_ref[...], y, preferred_element_type=jnp.float32))  # (C_high, 1)
    sl = jax.nn.sigmoid(
        jnp.dot(fc2l_ref[...], y, preferred_element_type=jnp.float32))  # (C_low, 1)

    # Gate the channels (sublane broadcast) in f32, then cast for the MXU.
    xh_g = (xh * sh).astype(compute_dtype)                   # (C_high, HW)
    xl_g = (xl * sl).astype(compute_dtype)                   # (C_low, HW)

    acc = jnp.dot(wh_ref[...].astype(compute_dtype), xh_g,
                  preferred_element_type=jnp.float32)
    acc = acc + jnp.dot(wl_ref[...].astype(compute_dtype), xl_g,
                        preferred_element_type=jnp.float32)
    acc = acc + b_ref[...]
    o_ref[...] = jnp.maximum(acc, 0.0).astype(o_ref.dtype)


def _tiled_kernel(xh_ref, xl_ref, sh_ref, sl_ref, wh_ref, wl_ref, b_ref, o_ref,
                  *, compute_dtype):
    """Streaming spatial tiles; gate pre-computed, folded into weight columns.

    xh_ref: (C_high, T)  xl_ref: (C_low, T)
    sh_ref: (1, C_high)  sl_ref: (1, C_low)   (per-batch sigmoid gate, f32)
    wh/wl:  (Cout, C_high)/(Cout, C_low)  b_ref: (Cout, 1)  o_ref: (Cout, T)
    """
    whs = (wh_ref[...] * sh_ref[...]).astype(compute_dtype)  # scale columns by gate
    wls = (wl_ref[...] * sl_ref[...]).astype(compute_dtype)
    acc = jnp.dot(whs, xh_ref[...].astype(compute_dtype),
                  preferred_element_type=jnp.float32)
    acc = acc + jnp.dot(wls, xl_ref[...].astype(compute_dtype),
                        preferred_element_type=jnp.float32)
    acc = acc + b_ref[...]
    o_ref[...] = jnp.maximum(acc, 0.0).astype(o_ref.dtype)


# ----------------------------------------------------------------------------
# Tiling helpers
# ----------------------------------------------------------------------------
def _fused_block_bytes(C, Cout, HW, in_bytes, out_bytes, cd_bytes):
    """Conservative per-step VMEM estimate for the fused (whole-HW) path."""
    io = 2 * HW * (C * in_bytes + Cout * out_bytes)        # double-buffered I/O
    temps = HW * (4 * C + cd_bytes * C + 4 * Cout)         # f32 copies, casts, acc
    return io + temps


def _pick_hw_tile(hw, C, Cout, in_bytes, out_bytes, cd_bytes,
                  vmem_budget, min_steps):
    """Largest 128-multiple lane tile under the VMEM budget, with enough steps
    along the spatial axis for pipelining / dual-TC sharding."""
    if hw <= 128:
        return hw
    per_lane = (2 * (C * in_bytes + Cout * out_bytes)      # double-buffered I/O
                + cd_bytes * C + 4 * Cout)                  # in-kernel temps
    max_by_vmem = max(vmem_budget // max(per_lane, 1), 128)
    max_by_steps = max(hw // max(min_steps, 1), 128)
    tile = min(max_by_vmem, max_by_steps, hw)
    tile = max((tile // 128) * 128, 128)
    return tile


# ----------------------------------------------------------------------------
# Wrapper
# ----------------------------------------------------------------------------
def att_module_pallas(high_features, low_features, fc1_w, fc2_w, conv_w, conv_b,
                      *, compute_dtype=None, out_dtype=None,
                      fused_vmem_budget=12 * 1024 * 1024,
                      tiled_vmem_budget=12 * 1024 * 1024,
                      min_hw_steps=4):
    """high_features: (B, C_high, H, W), low_features: (B, C_low, H, W)  [NCHW]
    fc1_w: (C//16, C)  fc2_w: (C, C//16)   (PyTorch Linear weight layout)
    conv_w: (Cout, C, 1, 1)  conv_b: (Cout,)
    Returns (B, Cout, H, W), matching the PyTorch module's forward."""
    B, C_high, H, W = high_features.shape
    _, C_low, _, _ = low_features.shape
    C = C_high + C_low
    HW = H * W
    Cout = conv_w.shape[0]
    Cr = fc1_w.shape[0]

    in_dtype = high_features.dtype
    if compute_dtype is None:
        compute_dtype = in_dtype
    if out_dtype is None:
        out_dtype = in_dtype

    # NCHW -> (B, C, HW): contiguous trailing-dim merge, no data movement, and
    # no dtype cast -- the kernel casts tiles on the VPU.
    xh = high_features.reshape(B, C_high, HW)
    xl = low_features.reshape(B, C_low, HW)

    # Tiny parameters: split high/low once, keep f32 (gate applied in f32).
    w = conv_w.reshape(Cout, C).astype(jnp.float32)
    wh, wl = w[:, :C_high], w[:, C_high:]
    bias = conv_b.reshape(Cout, 1).astype(jnp.float32)

    in_bytes = jnp.dtype(in_dtype).itemsize
    out_bytes = jnp.dtype(out_dtype).itemsize
    cd_bytes = jnp.dtype(compute_dtype).itemsize

    fused_ok = (_fused_block_bytes(C, Cout, HW, in_bytes, out_bytes, cd_bytes)
                <= fused_vmem_budget)

    if fused_ok:
        # ---- single-HBM-pass fused path: whole (C, HW) block per batch ----
        fc1 = fc1_w.astype(jnp.float32)
        fc2 = fc2_w.astype(jnp.float32)
        fc1h, fc1l = fc1[:, :C_high], fc1[:, C_high:]       # (Cr, C_high/low)
        fc2h, fc2l = fc2[:C_high, :], fc2[C_high:, :]       # (C_high/low, Cr)

        out = pl.pallas_call(
            functools.partial(_fused_kernel, compute_dtype=compute_dtype),
            out_shape=jax.ShapeDtypeStruct((B, Cout, HW), out_dtype),
            grid_spec=pltpu.PrefetchScalarGridSpec(
                num_scalar_prefetch=0,
                grid=(B,),
                in_specs=[
                    pl.BlockSpec((pl.Squeezed(), C_high, HW), lambda b: (b, 0, 0)),
                    pl.BlockSpec((pl.Squeezed(), C_low, HW), lambda b: (b, 0, 0)),
                    pl.BlockSpec((Cr, C_high), lambda b: (0, 0)),
                    pl.BlockSpec((Cr, C_low), lambda b: (0, 0)),
                    pl.BlockSpec((C_high, Cr), lambda b: (0, 0)),
                    pl.BlockSpec((C_low, Cr), lambda b: (0, 0)),
                    pl.BlockSpec((Cout, C_high), lambda b: (0, 0)),
                    pl.BlockSpec((Cout, C_low), lambda b: (0, 0)),
                    pl.BlockSpec((Cout, 1), lambda b: (0, 0)),
                ],
                out_specs=pl.BlockSpec((pl.Squeezed(), Cout, HW),
                                       lambda b: (b, 0, 0)),
            ),
            compiler_params=pltpu.CompilerParams(
                dimension_semantics=("parallel",)),
        )(xh, xl, fc1h, fc1l, fc2h, fc2l, wh, wl, bias)
        return out.reshape(B, Cout, H, W)

    # ---- streaming tiled path (large H*W) ----
    # The SE gate is a global spatial reduction, so one extra read of the
    # original features by XLA is unavoidable here; the kernel reads them once
    # more for the conv.  No intermediate dtype copies are materialized.
    gh = jnp.mean(xh.astype(jnp.float32), axis=2)            # (B, C_high)
    gl = jnp.mean(xl.astype(jnp.float32), axis=2)            # (B, C_low)
    y = jnp.concatenate([gh, gl], axis=1)                    # (B, C)
    y = jnp.maximum(y @ fc1_w.astype(jnp.float32).T, 0.0)    # (B, Cr)
    y = y @ fc2_w.astype(jnp.float32).T                      # (B, C)
    s = jax.nn.sigmoid(y)                                    # (B, C)
    sh = s[:, :C_high].reshape(B, 1, C_high)
    sl = s[:, C_high:].reshape(B, 1, C_low)

    tile = _pick_hw_tile(HW, C, Cout, in_bytes, out_bytes, cd_bytes,
                         tiled_vmem_budget, min_hw_steps)
    n_hw = pl.cdiv(HW, tile)                                 # ragged last block is masked

    out = pl.pallas_call(
        functools.partial(_tiled_kernel, compute_dtype=compute_dtype),
        out_shape=jax.ShapeDtypeStruct((B, Cout, HW), out_dtype),
        grid_spec=pltpu.PrefetchScalarGridSpec(
            num_scalar_prefetch=0,
            grid=(B, n_hw),
            in_specs=[
                pl.BlockSpec((pl.Squeezed(), C_high, tile), lambda b, t: (b, 0, t)),
                pl.BlockSpec((pl.Squeezed(), C_low, tile), lambda b, t: (b, 0, t)),
                pl.BlockSpec((pl.Squeezed(), 1, C_high), lambda b, t: (b, 0, 0)),
                pl.BlockSpec((pl.Squeezed(), 1, C_low), lambda b, t: (b, 0, 0)),
                pl.BlockSpec((Cout, C_high), lambda b, t: (0, 0)),
                pl.BlockSpec((Cout, C_low), lambda b, t: (0, 0)),
                pl.BlockSpec((Cout, 1), lambda b, t: (0, 0)),
            ],
            out_specs=pl.BlockSpec((pl.Squeezed(), Cout, tile),
                                   lambda b, t: (b, 0, t)),
        ),
        compiler_params=pltpu.CompilerParams(
            dimension_semantics=("parallel", "parallel")),
    )(xh, xl, sh, sl, wh, wl, bias)
    return out.reshape(B, Cout, H, W)


# ----------------------------------------------------------------------------
# Pure-JAX reference (mirrors the PyTorch forward, NCHW)
# ----------------------------------------------------------------------------
def att_module_ref(high_features, low_features, fc1_w, fc2_w, conv_w, conv_b):
    feats = jnp.concatenate([high_features, low_features], axis=1)
    B, C, H, W = feats.shape
    y = jnp.mean(feats, axis=(2, 3))                        # (B, C)
    y = jnp.maximum(y @ fc1_w.T, 0.0)                       # (B, C//16)
    y = y @ fc2_w.T                                         # (B, C)
    y = jax.nn.sigmoid(y)[:, :, None, None]                 # (B, C, 1, 1)
    feats = feats * y
    w = conv_w.reshape(conv_w.shape[0], C)                  # (Cout, C)
    out = jnp.einsum("bchw,oc->bohw", feats, w) + conv_b[None, :, None, None]
    return jnp.maximum(out, 0.0)


if __name__ == "__main__":
    key = jax.random.PRNGKey(0)
    B, C_high, C_low, H, W = 2, 32, 32, 16, 16
    C = C_high + C_low            # 64
    Cout = C_high                 # output_channel=None -> high_feature_channel
    Cr = C // 16                  # reduction = 16 -> 4

    k1, k2, k3, k4, k5, k6 = jax.random.split(key, 6)
    high = jax.random.normal(k1, (B, C_high, H, W), dtype=jnp.float32)
    low = jax.random.normal(k2, (B, C_low, H, W), dtype=jnp.float32)
    fc1_w = jax.random.normal(k3, (Cr, C), dtype=jnp.float32) * 0.1    # Linear(C, C//16)
    fc2_w = jax.random.normal(k4, (C, Cr), dtype=jnp.float32) * 0.1    # Linear(C//16, C)
    conv_w = jax.random.normal(k5, (Cout, C, 1, 1), dtype=jnp.float32) * 0.1
    conv_b = jax.random.normal(k6, (Cout,), dtype=jnp.float32) * 0.1

    ref = att_module_ref(high, low, fc1_w, fc2_w, conv_w, conv_b)

    # Fused (single-HBM-pass) path -- the default for this shape.
    out_fused = att_module_pallas(high, low, fc1_w, fc2_w, conv_w, conv_b)
    out_fused = jax.block_until_ready(out_fused)
    assert out_fused.shape == (B, Cout, H, W)
    assert jnp.allclose(out_fused, ref, atol=1e-4, rtol=1e-4)

    # Streaming tiled path (forced by a zero fused budget) for coverage.
    out_tiled = att_module_pallas(high, low, fc1_w, fc2_w, conv_w, conv_b,
                                  fused_vmem_budget=0)
    out_tiled = jax.block_until_ready(out_tiled)
    assert out_tiled.shape == (B, Cout, H, W)
    assert jnp.allclose(out_tiled, ref, atol=1e-4, rtol=1e-4)

    print("KERNEL_OK")
</pallas_src>

<mosaic_0001>
module attributes {stable_mosaic.version = 11 : i64} {
  func.func @_fused_kernel(%arg0: i32, %arg1: memref<1x32x256xf32, #tpu.memory_space<vmem>>, %arg2: memref<1x32x256xf32, #tpu.memory_space<vmem>>, %arg3: memref<4x32xf32, #tpu.memory_space<vmem>>, %arg4: memref<4x32xf32, #tpu.memory_space<vmem>>, %arg5: memref<32x4xf32, #tpu.memory_space<vmem>>, %arg6: memref<32x4xf32, #tpu.memory_space<vmem>>, %arg7: memref<32x32xf32, #tpu.memory_space<vmem>>, %arg8: memref<32x32xf32, #tpu.memory_space<vmem>>, %arg9: memref<32x1xf32, #tpu.memory_space<vmem>>, %arg10: memref<1x32x256xf32, #tpu.memory_space<vmem>>) attributes {dimension_semantics = [#tpu.dimension_semantics<parallel>], iteration_bounds = array<i64: 2>, scalar_prefetch = 0 : i64, scratch_operands = 0 : i64, tpu.core_type = #tpu.core_type<tc>, window_params = [{transform_indices = @transform_0, window_bounds = array<i64: 1, 32, 256>}, {transform_indices = @transform_1, window_bounds = array<i64: 1, 32, 256>}, {pipeline_mode = #tpu.pipeline_mode<synchronous>, transform_indices = @transform_2, window_bounds = array<i64: 4, 32>}, {pipeline_mode = #tpu.pipeline_mode<synchronous>, transform_indices = @transform_3, window_bounds = array<i64: 4, 32>}, {pipeline_mode = #tpu.pipeline_mode<synchronous>, transform_indices = @transform_4, window_bounds = array<i64: 32, 4>}, {pipeline_mode = #tpu.pipeline_mode<synchronous>, transform_indices = @transform_5, window_bounds = array<i64: 32, 4>}, {pipeline_mode = #tpu.pipeline_mode<synchronous>, transform_indices = @transform_6, window_bounds = array<i64: 32, 32>}, {pipeline_mode = #tpu.pipeline_mode<synchronous>, transform_indices = @transform_7, window_bounds = array<i64: 32, 32>}, {pipeline_mode = #tpu.pipeline_mode<synchronous>, transform_indices = @transform_8, window_bounds = array<i64: 32, 1>}, {transform_indices = @transform_9, window_bounds = array<i64: 1, 32, 256>}]} {
    %c0 = arith.constant 0 : index
    %c0_0 = arith.constant 0 : index
    %c0_1 = arith.constant 0 : index
    %0 = vector.load %arg1[%c0, %c0_0, %c0_1] : memref<1x32x256xf32, #tpu.memory_space<vmem>>, vector<1x32x256xf32>
    %1 = vector.shape_cast %0 : vector<1x32x256xf32> to vector<32x256xf32>
    %c0_2 = arith.constant 0 : index
    %c0_3 = arith.constant 0 : index
    %c0_4 = arith.constant 0 : index
    %2 = vector.load %arg2[%c0_2, %c0_3, %c0_4] : memref<1x32x256xf32, #tpu.memory_space<vmem>>, vector<1x32x256xf32>
    %3 = vector.shape_cast %2 : vector<1x32x256xf32> to vector<32x256xf32>
    %cst = arith.constant dense<0.000000e+00> : vector<32xf32>
    %4 = vector.multi_reduction <add>, %1, %cst [1] : vector<32x256xf32> to vector<32xf32>
    %5 = vector.shape_cast %4 : vector<32xf32> to vector<32x1xf32>
    %cst_5 = arith.constant 2.560000e+02 : f32
    %6 = vector.broadcast %cst_5 : f32 to vector<32x1xf32>
    %7 = arith.divf %5, %6 : vector<32x1xf32>
    %cst_6 = arith.constant dense<0.000000e+00> : vector<32xf32>
    %8 = vector.multi_reduction <add>, %3, %cst_6 [1] : vector<32x256xf32> to vector<32xf32>
    %9 = vector.shape_cast %8 : vector<32xf32> to vector<32x1xf32>
    %cst_7 = arith.constant 2.560000e+02 : f32
    %10 = vector.broadcast %cst_7 : f32 to vector<32x1xf32>
    %11 = arith.divf %9, %10 : vector<32x1xf32>
    %c0_8 = arith.constant 0 : index
    %c0_9 = arith.constant 0 : index
    %12 = vector.load %arg3[%c0_8, %c0_9] : memref<4x32xf32, #tpu.memory_space<vmem>>, vector<4x32xf32>
    %cst_10 = arith.constant dense<0.000000e+00> : vector<4x1xf32>
    %13 = tpu.matmul %12, %7, %cst_10 {dimension_numbers = #tpu.dot_dimension_numbers<[1], [0], [0], [1], [0, 0, 1, 1], [], []>} : vector<4x32xf32>, vector<32x1xf32>, vector<4x1xf32> -> vector<4x1xf32>
    %c0_11 = arith.constant 0 : index
    %c0_12 = arith.constant 0 : index
    %14 = vector.load %arg4[%c0_11, %c0_12] : memref<4x32xf32, #tpu.memory_space<vmem>>, vector<4x32xf32>
    %cst_13 = arith.constant dense<0.000000e+00> : vector<4x1xf32>
    %15 = tpu.matmul %14, %11, %cst_13 {dimension_numbers = #tpu.dot_dimension_numbers<[1], [0], [0], [1], [0, 0, 1, 1], [], []>} : vector<4x32xf32>, vector<32x1xf32>, vector<4x1xf32> -> vector<4x1xf32>
    %16 = arith.addf %13, %15 : vector<4x1xf32>
    %cst_14 = arith.constant 0.000000e+00 : f32
    %17 = vector.broadcast %cst_14 : f32 to vector<4x1xf32>
    %18 = arith.maximumf %16, %17 : vector<4x1xf32>
    %c0_15 = arith.constant 0 : index
    %c0_16 = arith.constant 0 : index
    %19 = vector.load %arg5[%c0_15, %c0_16] : memref<32x4xf32, #tpu.memory_space<vmem>>, vector<32x4xf32>
    %cst_17 = arith.constant dense<0.000000e+00> : vector<32x1xf32>
    %20 = tpu.matmul %19, %18, %cst_17 {dimension_numbers = #tpu.dot_dimension_numbers<[1], [0], [0], [1], [0, 0, 1, 1], [], []>} : vector<32x4xf32>, vector<4x1xf32>, vector<32x1xf32> -> vector<32x1xf32>
    %21 = arith.negf %20 : vector<32x1xf32>
    %22 = math.exp %21 : vector<32x1xf32>
    %cst_18 = arith.constant 1.000000e+00 : f32
    %23 = vector.broadcast %cst_18 : f32 to vector<32x1xf32>
    %24 = arith.addf %23, %22 : vector<32x1xf32>
    %25 = arith.divf %23, %24 : vector<32x1xf32>
    %c0_19 = arith.constant 0 : index
    %c0_20 = arith.constant 0 : index
    %26 = vector.load %arg6[%c0_19, %c0_20] : memref<32x4xf32, #tpu.memory_space<vmem>>, vector<32x4xf32>
    %cst_21 = arith.constant dense<0.000000e+00> : vector<32x1xf32>
    %27 = tpu.matmul %26, %18, %cst_21 {dimension_numbers = #tpu.dot_dimension_numbers<[1], [0], [0], [1], [0, 0, 1, 1], [], []>} : vector<32x4xf32>, vector<4x1xf32>, vector<32x1xf32> -> vector<32x1xf32>
    %28 = arith.negf %27 : vector<32x1xf32>
    %29 = math.exp %28 : vector<32x1xf32>
    %cst_22 = arith.constant 1.000000e+00 : f32
    %30 = vector.broadcast %cst_22 : f32 to vector<32x1xf32>
    %31 = arith.addf %30, %29 : vector<32x1xf32>
    %32 = arith.divf %30, %31 : vector<32x1xf32>
    %33 = vector.broadcast %25 : vector<32x1xf32> to vector<32x256xf32>
    %34 = arith.mulf %1, %33 : vector<32x256xf32>
    %35 = vector.broadcast %32 : vector<32x1xf32> to vector<32x256xf32>
    %36 = arith.mulf %3, %35 : vector<32x256xf32>
    %c0_23 = arith.constant 0 : index
    %c0_24 = arith.constant 0 : index
    %37 = vector.load %arg7[%c0_23, %c0_24] : memref<32x32xf32, #tpu.memory_space<vmem>>, vector<32x32xf32>
    %cst_25 = arith.constant dense<0.000000e+00> : vector<32x256xf32>
    %38 = tpu.matmul %37, %34, %cst_25 {dimension_numbers = #tpu.dot_dimension_numbers<[1], [0], [0], [1], [0, 0, 1, 1], [], []>} : vector<32x32xf32>, vector<32x256xf32>, vector<32x256xf32> -> vector<32x256xf32>
    %c0_26 = arith.constant 0 : index
    %c0_27 = arith.constant 0 : index
    %39 = vector.load %arg8[%c0_26, %c0_27] : memref<32x32xf32, #tpu.memory_space<vmem>>, vector<32x32xf32>
    %cst_28 = arith.constant dense<0.000000e+00> : vector<32x256xf32>
    %40 = tpu.matmul %39, %36, %cst_28 {dimension_numbers = #tpu.dot_dimension_numbers<[1], [0], [0], [1], [0, 0, 1, 1], [], []>} : vector<32x32xf32>, vector<32x256xf32>, vector<32x256xf32> -> vector<32x256xf32>
    %41 = arith.addf %38, %40 : vector<32x256xf32>
    %c0_29 = arith.constant 0 : index
    %c0_30 = arith.constant 0 : index
    %42 = vector.load %arg9[%c0_29, %c0_30] : memref<32x1xf32, #tpu.memory_space<vmem>>, vector<32x1xf32>
    %43 = vector.broadcast %42 : vector<32x1xf32> to vector<32x256xf32>
    %44 = arith.addf %41, %43 : vector<32x256xf32>
    %cst_31 = arith.constant 0.000000e+00 : f32
    %45 = vector.broadcast %cst_31 : f32 to vector<32x256xf32>
    %46 = arith.maximumf %44, %45 : vector<32x256xf32>
    %c0_32 = arith.constant 0 : index
    %c0_33 = arith.constant 0 : index
    %c0_34 = arith.constant 0 : index
    %47 = vector.load %arg10[%c0_32, %c0_33, %c0_34] : memref<1x32x256xf32, #tpu.memory_space<vmem>>, vector<1x32x256xf32>
    %48 = vector.shape_cast %47 : vector<1x32x256xf32> to vector<32x256xf32>
    %49 = vector.shape_cast %46 : vector<32x256xf32> to vector<1x32x256xf32>
    tpu.vector_store %arg10[%c0_32, %c0_33, %c0_34], %49 {strides = array<i32>} : memref<1x32x256xf32, #tpu.memory_space<vmem>>, vector<1x32x256xf32>,
    return
  }
  func.func @transform_0(%arg0: i32) -> (i32, i32, i32) {
    %c0_i32 = arith.constant 0 : i32
    %c0_i32_0 = arith.constant 0 : i32
    %c0_i32_1 = arith.constant 0 : i32
    return %arg0, %c0_i32, %c0_i32_0 : i32, i32, i32
  }
  func.func @transform_1(%arg0: i32) -> (i32, i32, i32) {
    %c0_i32 = arith.constant 0 : i32
    %c0_i32_0 = arith.constant 0 : i32
    %c0_i32_1 = arith.constant 0 : i32
    return %arg0, %c0_i32, %c0_i32_0 : i32, i32, i32
  }
  func.func @transform_2(%arg0: i32) -> (i32, i32) {
    %c0_i32 = arith.constant 0 : i32
    %c0_i32_0 = arith.constant 0 : i32
    %c0_i32_1 = arith.constant 0 : i32
    return %c0_i32, %c0_i32_0 : i32, i32
  }
  func.func @transform_3(%arg0: i32) -> (i32, i32) {
    %c0_i32 = arith.constant 0 : i32
    %c0_i32_0 = arith.constant 0 : i32
    %c0_i32_1 = arith.constant 0 : i32
    return %c0_i32, %c0_i32_0 : i32, i32
  }
  func.func @transform_4(%arg0: i32) -> (i32, i32) {
    %c0_i32 = arith.constant 0 : i32
    %c0_i32_0 = arith.constant 0 : i32
    %c0_i32_1 = arith.constant 0 : i32
    return %c0_i32, %c0_i32_0 : i32, i32
  }
  func.func @transform_5(%arg0: i32) -> (i32, i32) {
    %c0_i32 = arith.constant 0 : i32
    %c0_i32_0 = arith.constant 0 : i32
    %c0_i32_1 = arith.constant 0 : i32
    return %c0_i32, %c0_i32_0 : i32, i32
  }
  func.func @transform_6(%arg0: i32) -> (i32, i32) {
    %c0_i32 = arith.constant 0 : i32
    %c0_i32_0 = arith.constant 0 : i32
    %c0_i32_1 = arith.constant 0 : i32
    return %c0_i32, %c0_i32_0 : i32, i32
  }
  func.func @transform_7(%arg0: i32) -> (i32, i32) {
    %c0_i32 = arith.constant 0 : i32
    %c0_i32_0 = arith.constant 0 : i32
    %c0_i32_1 = arith.constant 0 : i32
    return %c0_i32, %c0_i32_0 : i32, i32
  }
  func.func @transform_8(%arg0: i32) -> (i32, i32) {
    %c0_i32 = arith.constant 0 : i32
    %c0_i32_0 = arith.constant 0 : i32
    %c0_i32_1 = arith.constant 0 : i32
    return %c0_i32, %c0_i32_0 : i32, i32
  }
  func.func @transform_9(%arg0: i32) -> (i32, i32, i32) {
    %c0_i32 = arith.constant 0 : i32
    %c0_i32_0 = arith.constant 0 : i32
    %c0_i32_1 = arith.constant 0 : i32
    return %arg0, %c0_i32, %c0_i32_0 : i32, i32, i32
  }
}

</mosaic_0001>

<bundles_post_ra>
// kernel: tpu_custom_call.1
= control target key start
LH: loop header
LB: loop body
LE: loop exit
PB: predicated region body
PF: predicated region fallthrough
CT: control target
= control target key end

     0   :  { %s1869_s0 = inlined_call_operand.hbm [shape: f32[2,32,256], index: 0, kind: input, shape index: {}]   ;;  %s1870_s1 = inlined_call_operand.hbm [shape: f32[2,32,256], index: 1, kind: input, shape index: {}]   ;;  %s1871_s2 = inlined_call_operand.vmem [shape: f32[4,32], index: 2, kind: input, shape index: {}]   ;;  %s1872_s3 = inlined_call_operand.vmem [shape: f32[4,32], index: 3, kind: input, shape index: {}]   ;;  %s1873_s4 = inlined_call_operand.vmem [shape: f32[32,4], index: 4, kind: input, shape index: {}]   ;;  %s1874_s5 = inlined_call_operand.vmem [shape: f32[32,4], index: 5, kind: input, shape index: {}]   ;;  %s1875_s6 = inlined_call_operand.vmem [shape: f32[32,32], index: 6, kind: input, shape index: {}]   ;;  %s1876_s7 = inlined_call_operand.vmem [shape: f32[32,32], index: 7, kind: input, shape index: {}]   ;;  %s1877_s8 = inlined_call_operand.vmem [shape: f32[32,1], index: 8, kind: input, shape index: {}]   ;;  %s1878_s9 = inlined_call_operand.hbm [shape: f32[2,32,256], index: 9, kind: output, shape index: {}]  }
   0x1   :  { %1888 = sst [smem:[#allocation17_spill]] %s1869_s0 }
   0x2   :  { %14 = vsyncpa [#allocation3], 0 }
   0x3   :  { %16 = vsyncpa [#allocation3 + $0x1], 0 }
   0x4   :  { %17 = vsyncpa [#allocation6], 0 }
   0x5   :  { %19 = vsyncpa [#allocation6 + $0x1], 0 }
   0x6   :  { %20 = vsyncpa [#allocation4], 0 }
   0x7   :  { %22 = vsyncpa [#allocation4 + $0x1], 0  ;;  %s1452_s30 = smov 0   ;;  %s1454_s10 = smov 0  }
   0x8   :  { %s1456_s11 = smov 0   ;;  %s1458_s12 = smov 0  }
   0x9 LB: > { %1889 = sst [smem:[#allocation11_spill]] %s1382_s30  ;;  %s1473_s13 = sadd.s32 4294967295, %s1394_s12   ;;  %s1394_s12 = sphi %s1458_s12, %s1912_s12   ;;  %s1390_s11 = sphi %s1456_s11, %s1917_s11   ;;  %s1386_s10 = sphi %s1454_s10, %s1916_s10   ;;  %s1382_s30 = sphi %s1452_s30, %s1915_s30  }
   0xa   : > { %1890 = sst [smem:[#allocation12_spill]] %s1390_s11  ;;  %s1111_s14 = sadd.s32 4294967294, %s1394_s12  }
   0xb   : > { %s1477_s15 = sadd.s32 1, %s1394_s12   ;;  %s35_s16 = sadd.s32 1, %s1390_s11 }
   0xc   : > { %1891 = sst [smem:[#allocation13_spill]] %s1477_s15  ;;  %s32_s17 = ssub.s32 %s1394_s12, %s1477_s15 }
   0xd   : > { %p42_p0 = scmp.ne.s32.totalorder %s1390_s11, %s1386_s10  ;;  %p33_p1 = scmp.eq.s32.totalorder %s32_s17, 0 }
   0xe   : > { %p43_p2 = scmp.eq.s32.totalorder %s1394_s12, 0  ;;  %p48_p3 = scmp.ne.s32.totalorder %s1386_s10, %s1382_s30 }
   0xf   : > { %p49_p4 = scmp.eq.s32.totalorder %s1473_s13, 0  ;;  %p245_p7 = scmp.eq.s32.totalorder %s1473_s13, 1 }
  0x10   : > { %s1489_s18 = scalar_select %p33_p1, %s1390_s11, %s35_s16  }
  0x11   : > { %p1491_p5 = por %p43_p2, %p42_p0  ;;  %p1495_p6 = por %p49_p4, %p48_p3 }
  0x12   : > { %1892 = sst [smem:[#allocation14_spill]] %s1489_s18  ;;  %p251_p8 = scmp.eq.s32.totalorder %s1111_s14, 1 }
  0x13   : > { %p1187_p10 = scmp.lt.s32.totalorder %s1394_s12, 2  ;;  %p1502_p11 = por %p245_p7, %p42_p0 }
  0x14   : > { %p1506_p12 = por %p251_p8, %p48_p3  ;;  %s1511_s23 = sand.u32 1, %s1390_s11  }
  0x15   : > { %s1895_s21 = scalar_select %p1502_p11, 1, 0 }
  0x16   : > { %s1897_s22 = scalar_select %p1506_p12, 1, 0 }
  0x17   : > { %1896 = sst [smem:[#allocation15_spill]] %s1895_s21  ;;  %s1881_s24 = sshll.u32 %s1394_s12, 6 }
  0x18   : > { %1898 = sst [smem:[#allocation16_spill]] %s1897_s22  ;;  %s1880_s25 = sshll.u32 %s1511_s23, 6 }
  0x19   : > { %s1899_s0 = sld [smem:[#allocation17_spill]]  ;;  %s296_s14 = scalar_lea.vmem [#allocation2], %s1880_s25 }
  0x1a   : > { %s304_s16 = sshll.u32 %s296_s14, 4  ;;  %p1524_p13 = pnand %p1187_p10, %p1491_p5  ;;  %s305_s16 = int_to_ptr.vmem [resolvable:$true] %s304_s16 }
  0x1b   : > { %p1120_p0 = scmp.ge.s32.totalorder %s1394_s12, 1  ;;  %p334_p1 = scmp.lt.s32.totalorder %s1394_s12, 3 }
  0x1c   : > { %s293_s18 = scalar_lea.sflag [#allocation3], %s1511_s23  ;;  %p1268_p3 = pneg %p1524_p13 }
  0x1f   : > { %s301_s28 = scalar_lea.hbm %s1899_s0, %s1881_s24 }
  0x20   : > { %s302_s29 = sshll.u32 %s301_s28, 4  ;;  %s1271_s28 = scalar_lea.hbm %s1899_s0, 128  ;;  %s303_s29 = int_to_ptr.hbm [resolvable:$true] %s302_s29 }
  0x21   : > { %s1264_s11 = sshra.s32 %s303_s29, 4  ;;  %s1265_s11 = int_to_ptr.hbm [resolvable:$true] %s1264_s11 }
  0x22   : > { %s1266_s26 = scalar_lea.hbm %s1265_s11, 64  ;;  %p1272_p5 = scmp.lt.s32.totalorder %s1265_s11, %s1899_s0 }
  0x23   : > { %p1267_p2 = scmp.ne.s32.totalorder %s1265_s11, %s1266_s26  ;;  %p1273_p8 = scmp.lt.s32.totalorder %s1271_s28, %s1266_s26 }
  0x25   : > { %p1269_p4 = pnand %p1268_p3, %p1267_p2  ;;  %p1274_p10 = por %p1273_p8, %p1272_p5 }
  0x27   : > { %p1270_p7 = pneg %p1269_p4 }
  0x29   : > { %p1275_p9 = pnand %p1274_p10, %p1270_p7 }
  0x2b   : > { %1278 = shalt.err (!%p1275_p9)
}
  0x2c   : > { %s1396_s24 = smov 256   ;;  %s1397_s15 = smov 16  }
  0x2d   : > { %1179 = dma.hbm_to_vmem [thread:$0]  (!%p1524_p13), %s303_s29, 1024, %s305_s16, %s293_s18, %s1396_s24, %s1396_s24, %s1397_s15  }
  0x2e   : > { %p1548_p2 = pnand %p1120_p0, %p334_p1  ;;  %s1902_s11 = sshll.u32 %s1394_s12, 6 }
  0x2f   : > { %s323_s27 = scalar_lea.hbm %s1870_s1, %s1902_s11  ;;  %s1903_s14 = sshll.u32 %s1511_s23, 6 }
  0x30   : > { %s324_s28 = sshll.u32 %s323_s27, 4  ;;  %s318_s0 = scalar_lea.vmem [#allocation5], %s1903_s14  ;;  %s325_s28 = int_to_ptr.hbm [resolvable:$true] %s324_s28 }
  0x31   : > { %s326_s22 = sshll.u32 %s318_s0, 4  ;;  %s315_s30 = scalar_lea.sflag [#allocation6], %s1511_s23  ;;  %s327_s22 = int_to_ptr.vmem [resolvable:$true] %s326_s22 }
  0x32   : > { %s1294_s21 = sshra.s32 %s325_s28, 4  ;;  %s1301_s26 = scalar_lea.hbm %s1870_s1, 128  ;;  %s1295_s21 = int_to_ptr.hbm [resolvable:$true] %s1294_s21 }
  0x33   : > { %s1296_s18 = scalar_lea.hbm %s1295_s21, 64  ;;  %p1302_p4 = scmp.lt.s32.totalorder %s1295_s21, %s1870_s1 }
  0x34   : > { %p1297_p9 = scmp.ne.s32.totalorder %s1295_s21, %s1296_s18  ;;  %p1303_p7 = scmp.lt.s32.totalorder %s1301_s26, %s1296_s18 }
  0x36   : > { %p1299_p0 = pnand %p1297_p9, %p1268_p3  ;;  %p1304_p5 = por %p1303_p7, %p1302_p4 }
  0x38   : > { %p1300_p1 = pneg %p1299_p0 }
  0x3a   : > { %p1305_p8 = pnand %p1304_p5, %p1300_p1 }
  0x3c   : > { %1308 = shalt.err (!%p1305_p8)
}
  0x3d   : > { %1182 = dma.hbm_to_vmem [thread:$0]  (!%p1524_p13), %s325_s28, 1024, %s327_s22, %s315_s30, %s1396_s24, %s1396_s24, %s1397_s15  }
  0x3e   : > { %338 = sbr.rel (%p1548_p2) target bundleno = 799 (0x31f), region = 56  ;;  %s1574_s0 = sand.u32 (!%p1548_p2), 1, %s1386_s10  }
  0x3f   : > { %s1577_s23 = sshll.u32 (!%p1548_p2), %s1574_s0, 6  ;;  %s341_s21 = scalar_lea.sflag (!%p1548_p2), [#allocation3], %s1574_s0 }
  0x40   : > { %s1581_s27 = scalar_lea.vmem (!%p1548_p2), [#allocation2], %s1577_s23 }
  0x43   : > { %1369 = dma.done.wait (%p1495_p6), %s341_s21, 1024  }
  0x44   : > { %1371 = vsyncadd (%p1495_p6), %s341_s21, 4294966272  ;;  %s351_s30 = scalar_lea.sflag [#allocation6], %s1574_s0  ;;  %s354_s15 = scalar_lea.vmem [#allocation5], %s1577_s23 }
  0x45   : > { %1373 = dma.done.wait (%p1495_p6), %s351_s30, 1024  }
  0x46   : > { %1375 = vsyncadd (%p1495_p6), %s351_s30, 4294966272  ;;  %v1594_v0 = vld [vmem:[%s1581_s27 + $0x30] sm:$0xff]  ;;  %v1597_v1 = vld [vmem:[%s1581_s27 + $0x38] sm:$0xff]  ;;  %v1398_v24 = vmov 256.0   ;;  %vm452_vm1 = vcmask 261120   ;;  %vm517_vm2 = vcmask 1043456  }
  0x47   : > { %v1600_v2 = vld [vmem:[%s1581_s27 + $0x20] sm:$0xff]  ;;  %v420_v3 = vadd.f32 %v1597_v1, %v1594_v0  ;;  %v1605_v4 = vld [vmem:[%s1581_s27 + $0x28] sm:$0xff]  ;;  %v1608_v5 = vld [vmem:[%s1581_s27 + $0x10] sm:$0xff]  ;;  %1230 = vrcp.f32 %v1398_v24  ;;  %vm504_vm3 = vcmask 31744   ;;  %s1825_s26 = scalar_lea.vmem [#allocation7], %s1577_s23  ;;  %s1167_s23 = sshll.u32 %s1473_s13, 6 }
  0x48   : > { %v1611_v6 = vld [vmem:[%s1581_s27 + $0x18] sm:$0xff]  ;;  %v417_v7 = vadd.f32 %v1605_v4, %v1600_v2  ;;  %v1617_v9 = vld [vmem:[%s354_s15 + $0x30] sm:$0xff]  ;;  %v1621_v11 = vld [vmem:[%s354_s15 + $0x20] sm:$0xff]  ;;  %s1011_s21 = scalar_lea.hbm %s1878_s9, %s1167_s23  ;;  %s1344_s25 = scalar_lea.hbm %s1878_s9, 128 }
  0x49   : > { %v414_v8 = vadd.f32 %v1611_v6, %v1608_v5  ;;  %421 = vadd.xlane.f32.xlu0 %v420_v3  ;;  %v1619_v10 = vld [vmem:[%s354_s15 + $0x38] sm:$0xff]  ;;  %v1623_v12 = vld [vmem:[%s354_s15 + $0x28] sm:$0xff]  ;;  %v1625_v13 = vld [vmem:[%s354_s15 + $0x10] sm:$0xff]  ;;  %v1399_v3 = vmov 0   ;;  %s1014_s13 = sshll.u32 %s1011_s21, 4  ;;  %s1015_s13 = int_to_ptr.hbm [resolvable:$true] %s1014_s13 }
  0x4a   : > { %418 = vadd.xlane.f32.xlu1 %v417_v7  ;;  %v1627_v14 = vld [vmem:[%s354_s15 + $0x18] sm:$0xff]  ;;  %v443_v15 = vadd.f32 %v1619_v10, %v1617_v9  ;;  %v440_v16 = vadd.f32 %v1623_v12, %v1621_v11  ;;  %v1636_v18 = vld [vmem:[%s1581_s27] sm:$0xff]  ;;  %v1639_v19 = vld [vmem:[%s1581_s27 + $0x8] sm:$0xff]  ;;  %1229 = vset.pattern.permute.xlu2 %v1399_v3  ;;  %s1012_s27 = sshll.u32 %s1825_s26, 4  ;;  %s1338_s20 = sshra.s32 %s1015_s13, 4  ;;  %s1013_s27 = int_to_ptr.vmem [resolvable:$true] %s1012_s27  ;;  %s1339_s20 = int_to_ptr.hbm [resolvable:$true] %s1338_s20 }
  0x4b   : > { %415 = vadd.xlane.f32.xlu2 %v414_v8  ;;  %v437_v17 = vadd.f32 %v1627_v14, %v1625_v13  ;;  %v1641_v20 = vld [vmem:[%s354_s15] sm:$0xff]  ;;  %v1643_v21 = vld [vmem:[%s354_s15 + $0x8] sm:$0xff]  ;;  %v411_v22 = vadd.f32 %v1639_v19, %v1636_v18  ;;  %v502_v57 = vld [vmem:[%s1873_s4 + $0x10] sm:$0xff]  ;;  %1228 = vset.pattern.permute.xlu1 %v1399_v3  ;;  %s1000_s15 = scalar_lea.sflag [#allocation4], %s1574_s0  ;;  %s1340_s22 = scalar_lea.hbm %s1339_s20, 64 }
  0x4c   : > { %v434_v23 = vadd.f32 %v1643_v21, %v1641_v20  ;;  %v450_v46 = vld [vmem:[%s1871_s2] sm:$0xf]  ;;  %v501_v53 = vld [vmem:[%s1873_s4 + $0x8] sm:$0xff]  ;;  %v628_v58 = vld [vmem:[%s1874_s5 + $0x10] sm:$0xff]  ;;  %1227 = vset.pattern.permute.xlu0 %v1399_v3  ;;  %p1341_p6 = scmp.ne.s32.totalorder %s1339_s20, %s1340_s22  ;;  %p1345_p10 = scmp.lt.s32.totalorder %s1339_s20, %s1878_s9 }
  0x4d   : > { %v1231_v25 = vpop.eup %1230  ;;  %v451_v48 = vld [vmem:[%s1872_s3] sm:$0xf]  ;;  %v627_v54 = vld [vmem:[%s1874_s5 + $0x8] sm:$0xff]  ;;  %v503_v59 = vld [vmem:[%s1873_s4 + $0x18] sm:$0xff]  ;;  %p1346_p2 = scmp.lt.s32.totalorder %s1344_s25, %s1340_s22 }
  0x4e   : > { %v424_v26 = vmul.f32 256.0, %v1231_v25  ;;  %vm428_vm0 = vweird.f32 %v1231_v25  ;;  %v500_v55 = vld [vmem:[%s1873_s4] sm:$0xff]  ;;  %v629_v60 = vld [vmem:[%s1874_s5 + $0x18] sm:$0xff]  ;;  %p1342_p13 = pnand %p1341_p6, %p1502_p11 }
  0x4f   : > { %v626_v56 = vld [vmem:[%s1874_s5] sm:$0xff]  ;;  %p1347_p9 = por %p1346_p2, %p1345_p10 }
  0x50   : > { %v425_v27 = vsub.f32 1.0, %v424_v26  ;;  %p1343_p3 = pneg %p1342_p13 }
  0x51   : > { %444 = vadd.xlane.f32.xlu0 %v443_v15 }
  0x52   : > { %441 = vadd.xlane.f32.xlu1 %v440_v16  ;;  %v426_v28 = vmul.f32 %v1231_v25, %v425_v27  ;;  %p1348_p0 = pnand %p1347_p9, %p1343_p3 }
  0x53   : > { %438 = vadd.xlane.f32.xlu2 %v437_v17 }
  0x54   : > { %v427_v29 = vadd.f32 %v1231_v25, %v426_v28 }
  0x56   : > { %v429_v30 = vsel %vm428_vm0, %v1231_v25, %v427_v29 }
  0x59   : > { %412 = vadd.xlane.f32.xlu0 %v411_v22 }
  0x5a   : > { %435 = vadd.xlane.f32.xlu1 %v434_v23 }
  0xbc   : > { %v422_v31 = vpop.xlane.xlu0 %421 }
  0xbd   : > { %v419_v32 = vpop.xlane.xlu1 %418  ;;  %v433_v33 = vmul.f32 %v429_v30, %v422_v31 }
  0xbe   : > { %v416_v34 = vpop.xlane.xlu2 %415  ;;  %v432_v35 = vmul.f32 %v429_v30, %v419_v32 }
  0xbf   : > { %491 = vmatpush.msra.mxu1 %v433_v33  ;;  %v431_v36 = vmul.f32 %v429_v30, %v416_v34 }
  0xc1   : > { %492 = vmatpush.msra.mxu1 %v432_v35 }
  0xc3   : > { %493 = vmatpush.msra.mxu1 %v431_v36 }
  0xc4   : > { %v445_v37 = vpop.xlane.xlu0 %444 }
  0xc5   : > { %v442_v38 = vpop.xlane.xlu1 %441  ;;  %v449_v39 = vmul.f32 %v445_v37, %v429_v30 }
  0xc6   : > { %v439_v40 = vpop.xlane.xlu2 %438  ;;  %v448_v41 = vmul.f32 %v442_v38, %v429_v30 }
  0xc7   : > { %468 = vmatpush.msra.mxu0 %v449_v39  ;;  %v447_v42 = vmul.f32 %v439_v40, %v429_v30 }
  0xc9   : > { %469 = vmatpush.msra.mxu0 %v448_v41 }
  0xcb   : > { %470 = vmatpush.msra.mxu0 %v447_v42 }
  0xcc   : > { %v413_v43 = vpop.xlane.xlu0 %412 }
  0xcd   : > { %v436_v44 = vpop.xlane.xlu1 %435  ;;  %v430_v45 = vmul.f32 %v429_v30, %v413_v43 }
  0xce   : > { %v446_v47 = vmul.f32 %v436_v44, %v429_v30 }
  0xcf   : > { %494 = vmatpush.msra.mxu1 %v430_v45 }
  0xd0   : > { %471 = vmatpush.msra.mxu0 %v446_v47  ;;  %1125 = vmatmul.msk.f32.vlgmr.msra.gmra.mxu1 %vm452_vm1, %v450_v46 }
  0xd1   : > { %1124 = vmatmul.msk.f32.vlgmr.msra.gmra.mxu0 %vm452_vm1, %v451_v48 }
 0x14d   : > { %v496_v49 = vpop.f32.mrf.mxu1 }
 0x14e   : > { %v473_v50 = vpop.f32.mrf.mxu0 }
 0x14f   : > { %v497_v51 = vadd.f32 %v496_v49, %v473_v50 }
 0x151   : > { %v499_v52 = vmax.f32 %v497_v51, 0.0 }
 0x153   : > { %1126 = vmatpush.msk.msrb.mxu0 %vm517_vm2, %v499_v52  ;;  %1168 = vmatpush.msk.msra.mxu2 %vm517_vm2, %v499_v52 }
 0x154   : > { %1135 = vmatpush.msk.msrb.mxu1 %vm517_vm2, %v499_v52  ;;  %1169 = vmatpush.msk.msra.mxu3 %vm517_vm2, %v499_v52 }
 0x155   : > { %1128 = vmatmul.msk.f32.vlgmr.msra.gmra.mxu2 %vm504_vm3, %v501_v53  ;;  %1137 = vmatmul.msk.f32.vlgmr.msra.gmra.mxu3 %vm504_vm3, %v627_v54 }
 0x156   : > { %1127 = vmatmul.msk.f32.vlgmr.msrb.gmra.mxu0 %vm504_vm3, %v500_v55  ;;  %1136 = vmatmul.msk.f32.vlgmr.msrb.gmra.mxu1 %vm504_vm3, %v626_v56 }
 0x15d   : > { %1129 = vmatmul.msk.f32.gmra.mxu2 %vm504_vm3, %v502_v57  ;;  %1138 = vmatmul.msk.f32.gmra.mxu3 %vm504_vm3, %v628_v58 }
 0x165   : > { %1130 = vmatmul.msk.f32.gmra.mxu2 %vm504_vm3, %v503_v59  ;;  %1139 = vmatmul.msk.f32.gmra.mxu3 %vm504_vm3, %v629_v60 }
 0x1d3   : > { %v538_v61 = vpop.f32.mrf.mxu0  ;;  %v659_v63 = vpop.f32.mrf.mxu1 }
 0x1d4   : > { %v1131_v62 = vmul.f32 -1.442695, %v538_v61  ;;  %v1140_v16 = vmul.f32 -1.442695, %v659_v63 }
 0x1d6   : > { %1232 = vpow2.f32 %v1131_v62 }
 0x1d8   : > { %v541_v7 = vpop.f32.mrf.mxu2  ;;  %v662_v8 = vpop.f32.mrf.mxu3 }
 0x1d9   : > { %v1132_v15 = vmul.f32 -1.442695, %v541_v7  ;;  %v1141_v31 = vmul.f32 -1.442695, %v662_v8 }
 0x1db   : > { %1234 = vpow2.f32 %v1132_v15 }
 0x1dc   : > { %v1233_v17 = vpop.eup %1232  ;;  %1236 = vpow2.f32 %v1140_v16 }
 0x1dd   : > { %v562_v22 = vadd.f32 1.0, %v1233_v17 }
 0x1df   : > { %1238 = vrcp.f32 %v562_v22  ;;  %v577_v34 = vand.u32 2147483648, %v562_v22  ;;  %vm571_vm4 = vweird.f32 %v562_v22  ;;  %v575_v38 = vand.u32 2147483647, %v562_v22 }
 0x1e0   : > { %v544_v23 = vpop.f32.mrf.mxu2  ;;  %v665_v24 = vpop.f32.mrf.mxu3 }
 0x1e1   : > { %v1235_v25 = vpop.eup %1234  ;;  %v1133_v26 = vmul.f32 -1.442695, %v544_v23  ;;  %v1142_v28 = vmul.f32 -1.442695, %v665_v24  ;;  %v578_v47 = vor.u32 1.1754944e-38, %v577_v34  ;;  %vm576_vm7 = vcmp.eq.f32.partialorder %v575_v38, 8.507059e+37 }
 0x1e2   : > { %v563_v27 = vadd.f32 1.0, %v1235_v25  ;;  %v1237_v29 = vpop.eup %1236 }
 0x1e3   : > { %1240 = vpow2.f32 %v1133_v26  ;;  %v1689_v32 = vadd.f32 1.0, %v1237_v29 }
 0x1e4   : > { %1242 = vrcp.f32 %v563_v27  ;;  %v590_v52 = vand.u32 2147483647, %v563_v27  ;;  %v592_v53 = vand.u32 2147483648, %v563_v27  ;;  %vm586_vm9 = vweird.f32 %v563_v27 }
 0x1e5   : > { %v1239_v30 = vpop.eup %1238  ;;  %1244 = vpow2.f32 %v1142_v28  ;;  %vm692_vm13 = vweird.f32 %v1689_v32  ;;  %v698_v38 = vand.u32 2147483648, %v1689_v32 }
 0x1e6   : > { %v567_v33 = vmul.f32 %v1239_v30, %v562_v22  ;;  %vm572_vm5 = vweird.f32 %v1239_v30  ;;  %1246 = vpow2.f32 %v1141_v31  ;;  %v593_v63 = vor.u32 1.1754944e-38, %v592_v53 }
 0x1e7   : > { %1248 = vrcp.f32 %v1689_v32  ;;  %vm1694_vm6 = vmor %vm571_vm4, %vm572_vm5  ;;  %vm591_vm11 = vcmp.eq.f32.partialorder %v590_v52, 8.507059e+37 }
 0x1e8   : > { %v547_v35 = vpop.f32.mrf.mxu2  ;;  %v668_v36 = vpop.f32.mrf.mxu3  ;;  %v568_v37 = vsub.f32 1.0, %v567_v33 }
 0x1e9   : > { %v1241_v39 = vpop.eup %1240  ;;  %v1134_v40 = vmul.f32 -1.442695, %v547_v35  ;;  %v1143_v41 = vmul.f32 -1.442695, %v668_v36 }
 0x1ea   : > { %v1243_v42 = vpop.eup %1242  ;;  %v1691_v43 = vadd.f32 1.0, %v1241_v39  ;;  %v569_v44 = vmul.f32 %v1239_v30, %v568_v37 }
 0x1eb   : > { %1250 = vpow2.f32 %v1134_v40  ;;  %v582_v45 = vmul.f32 %v1243_v42, %v563_v27  ;;  %v1245_v48 = vpop.eup %1244  ;;  %vm587_vm8 = vweird.f32 %v1243_v42 }
 0x1ec   : > { %1252 = vrcp.f32 %v1691_v43  ;;  %v570_v49 = vadd.f32 %v1239_v30, %v569_v44  ;;  %v1699_v50 = vadd.f32 1.0, %v1245_v48  ;;  %v1247_v55 = vpop.eup %1246  ;;  %vm588_vm10 = vmor %vm586_vm9, %vm587_vm8  ;;  %v607_v26 = vand.u32 2147483648, %v1691_v43 }
 0x1ed   : > { %1254 = vpow2.f32 %v1143_v41  ;;  %v583_v51 = vsub.f32 1.0, %v582_v45  ;;  %v1704_v58 = vpop.eup %1248  ;;  %v1708_v7 = vadd.f32 1.0, %v1247_v55  ;;  %v605_v28 = vand.u32 2147483647, %v1691_v43 }
 0x1ee   : > { %v574_v54 = vsel %vm1694_vm6, %v1239_v30, %v570_v49  ;;  %1256 = vrcp.f32 %v1699_v50  ;;  %v688_v22 = vmul.f32 %v1704_v58, %v1689_v32  ;;  %v726_v31 = vand.u32 2147483647, %v1699_v50 }
 0x1ef   : > { %v584_v56 = vmul.f32 %v1243_v42, %v583_v51  ;;  %v579_v57 = vsel %vm576_vm7, %v578_v47, %v574_v54  ;;  %v728_v33 = vand.u32 2147483648, %v1699_v50  ;;  %vm601_vm14 = vweird.f32 %v1691_v43 }
 0x1f0   : > { %749 = vperm.xlu2 %1229, %v579_v57   ;;  %v689_v30 = vsub.f32 1.0, %v688_v22  ;;  %v608_v37 = vor.u32 1.1754944e-38, %v607_v26  ;;  %vm606_vm2 = vcmp.eq.f32.partialorder %v605_v28, 8.507059e+37  ;;  %vm693_vm3 = vweird.f32 %v1704_v58 }
 0x1f1   : > { %v1251_v59 = vpop.eup %1250  ;;  %v585_v60 = vadd.f32 %v1243_v42, %v584_v56  ;;  %vm722_vm4 = vweird.f32 %v1699_v50  ;;  %vm727_vm6 = vcmp.eq.f32.partialorder %v726_v31, 8.507059e+37  ;;  %v729_v45 = vor.u32 1.1754944e-38, %v728_v33  ;;  %vm1740_vm9 = vmor %vm692_vm13, %vm693_vm3 }
 0x1f2   : > { %v1253_v61 = vpop.eup %1252  ;;  %v1706_v62 = vadd.f32 1.0, %v1251_v59  ;;  %v696_v56 = vand.u32 2147483647, %v1689_v32  ;;  %v713_v31 = vand.u32 2147483648, %v1708_v7  ;;  %vm707_vm3 = vweird.f32 %v1708_v7 }
 0x1f3   : > { %v1255_v3 = vpop.eup %1254  ;;  %v589_v8 = vsel %vm588_vm10, %v1243_v42, %v585_v60  ;;  %v597_v15 = vmul.f32 %v1253_v61, %v1691_v43  ;;  %vm602_vm12 = vweird.f32 %v1253_v61  ;;  %v690_v43 = vmul.f32 %v1704_v58, %v689_v30  ;;  %v953_v30 = vld [vmem:[%s1877_s8 + $0x10] sm:$0xff] }
 0x1f4   : > { %1258 = vrcp.f32 %v1706_v62  ;;  %v1712_v16 = vadd.f32 1.0, %v1255_v3  ;;  %v594_v17 = vsel %vm591_vm11, %v593_v63, %v589_v8  ;;  %v1257_v23 = vpop.eup %1256  ;;  %vm603_vm0 = vmor %vm601_vm14, %vm602_vm12  ;;  %vm616_vm7 = vweird.f32 %v1706_v62  ;;  %v951_v3 = vld [vmem:[%s1877_s8] sm:$0xff] }
 0x1f5   : > { %754 = vperm.xlu1 %1228, %v594_v17   ;;  %v598_v24 = vsub.f32 1.0, %v597_v15  ;;  %v718_v25 = vmul.f32 %v1257_v23, %v1699_v50  ;;  %vm723_vm15 = vweird.f32 %v1257_v23  ;;  %v620_v51 = vand.u32 2147483647, %v1706_v62 }
 0x1f6   : > { %1260 = vrcp.f32 %v1712_v16  ;;  %vm724_vm5 = vmor %vm722_vm4, %vm723_vm15  ;;  %v622_v52 = vand.u32 2147483648, %v1706_v62  ;;  %v691_v55 = vadd.f32 %v1704_v58, %v690_v43  ;;  %v699_v63 = vor.u32 1.1754944e-38, %v698_v38 }
 0x1f7   : > { %v599_v27 = vmul.f32 %v1253_v61, %v598_v24  ;;  %1262 = vrcp.f32 %v1708_v7  ;;  %v719_v29 = vsub.f32 1.0, %v718_v25  ;;  %vm621_vm11 = vcmp.eq.f32.partialorder %v620_v51, 8.507059e+37 }
 0x1f8   : > { %v623_v8 = vor.u32 1.1754944e-38, %v622_v52  ;;  %vm737_vm12 = vweird.f32 %v1712_v16  ;;  %v695_v32 = vsel %vm1740_vm9, %v1704_v58, %v691_v55  ;;  %vm697_vm14 = vcmp.eq.f32.partialorder %v696_v56, 8.507059e+37  ;;  %v954_v58 = vld [vmem:[%s1877_s8 + $0x18] sm:$0xff] }
 0x1f9   : > { %v600_v34 = vadd.f32 %v1253_v61, %v599_v27  ;;  %v720_v36 = vmul.f32 %v1257_v23, %v719_v29  ;;  %v743_v22 = vand.u32 2147483648, %v1712_v16  ;;  %v700_v25 = vsel %vm697_vm14, %v699_v63, %v695_v32 }
 0x1fa   : > { %v1259_v35 = vpop.eup %1258  ;;  %v711_v33 = vand.u32 2147483647, %v1708_v7 }
 0x1fb   : > { %v604_v39 = vsel %vm603_vm0, %v1253_v61, %v600_v34  ;;  %v612_v40 = vmul.f32 %v1259_v35, %v1706_v62  ;;  %v721_v42 = vadd.f32 %v1257_v23, %v720_v36  ;;  %vm617_vm8 = vweird.f32 %v1259_v35 }
 0x1fc   : > { %v1261_v41 = vpop.eup %1260  ;;  %v609_v44 = vsel %vm606_vm2, %v608_v37, %v604_v39  ;;  %vm618_vm10 = vmor %vm616_vm7, %vm617_vm8  ;;  %v741_v62 = vand.u32 2147483647, %v1712_v16  ;;  %v744_v26 = vor.u32 1.1754944e-38, %v743_v22  ;;  %v952_v37 = vld [vmem:[%s1877_s8 + $0x8] sm:$0xff] }
 0x1fd   : > { %759 = vperm.xlu0 %1227, %v609_v44   ;;  %v613_v46 = vsub.f32 1.0, %v612_v40  ;;  %v733_v47 = vmul.f32 %v1261_v41, %v1712_v16  ;;  %v1263_v48 = vpop.eup %1262  ;;  %v725_v49 = vsel %vm724_vm5, %v1257_v23, %v721_v42  ;;  %vm738_vm13 = vweird.f32 %v1261_v41 }
 0x1fe   : > { %v730_v53 = vsel %vm727_vm6, %v729_v45, %v725_v49  ;;  %v703_v61 = vmul.f32 %v1263_v48, %v1708_v7  ;;  %vm739_vm15 = vmor %vm737_vm12, %vm738_vm13  ;;  %vm742_vm0 = vcmp.eq.f32.partialorder %v741_v62, 8.507059e+37  ;;  %vm708_vm2 = vweird.f32 %v1263_v48 }
 0x1ff   : > { %v614_v50 = vmul.f32 %v1259_v35, %v613_v46  ;;  %v734_v54 = vsub.f32 1.0, %v733_v47  ;;  %787 = vperm.xlu1 %1228, %v730_v53   ;;  %vm709_vm4 = vmor %vm707_vm3, %vm708_vm2  ;;  %vm712_vm5 = vcmp.eq.f32.partialorder %v711_v33, 8.507059e+37  ;;  %v810_v53 = vld [vmem:[%s1876_s7 + $0x18] sm:$0xff] }
 0x200   : > { %v704_v24 = vsub.f32 1.0, %v703_v61 }
 0x201   : > { %v615_v59 = vadd.f32 %v1259_v35, %v614_v50  ;;  %v735_v60 = vmul.f32 %v1261_v41, %v734_v54 }
 0x202   : > { %v705_v28 = vmul.f32 %v1263_v48, %v704_v24 }
 0x203   : > { %v619_v15 = vsel %vm618_vm10, %v1259_v35, %v615_v59  ;;  %v736_v23 = vadd.f32 %v1261_v41, %v735_v60  ;;  %v714_v35 = vor.u32 1.1754944e-38, %v713_v31 }
 0x204   : > { %v624_v17 = vsel %vm621_vm11, %v623_v8, %v619_v15  ;;  %v706_v16 = vadd.f32 %v1263_v48, %v705_v28 }
 0x205   : > { %957 = vperm.xlu0 %1227, %v951_v3   ;;  %764 = vperm.xlu2 %1229, %v624_v17   ;;  %v740_v27 = vsel %vm739_vm15, %v1261_v41, %v736_v23 }
 0x206   : > { %v745_v29 = vsel %vm742_vm0, %v744_v26, %v740_v27  ;;  %v710_v34 = vsel %vm709_vm4, %v1263_v48, %v706_v16 }
 0x207   : > { %777 = vperm.xlu1 %1228, %v700_v25   ;;  %v715_v36 = vsel %vm712_vm5, %v714_v35, %v710_v34 }
 0x20d   : > { %972 = vperm.xlu0 %1227, %v954_v58   ;;  %792 = vperm.xlu2 %1229, %v745_v29  }
 0x20f   : > { %967 = vperm.xlu1 %1228, %v953_v30  }
 0x215   : > { %782 = vperm.xlu2 %1229, %v715_v36  }
 0x21d   : > { %962 = vperm.xlu2 %1229, %v952_v37  }
 0x24a   : > { %v750_v38 = vpop.permute.xlu2 %749 }
 0x25f   : > { %v765_v39 = vpop.permute.xlu2 %764 }
 0x260   : > { %v773_v40 = vmul.f32 %v765_v39, %v1594_v0  ;;  %v774_v41 = vmul.f32 %v765_v39, %v1597_v1 }
 0x262   : > { %905 = vmatpush.msrb.mxu2 %v773_v40  ;;  %934 = vmatpush.msrb.mxu3 %v774_v41 }
 0x267   : > { %v793_v7 = vpop.permute.xlu2 %792  ;;  %v755_v42 = vpop.permute.xlu1 %754 }
 0x268   : > { %v801_v44 = vmul.f32 %v793_v7, %v1617_v9  ;;  %v802_v43 = vmul.f32 %v793_v7, %v1619_v10  ;;  %v769_v0 = vmul.f32 %v755_v42, %v1608_v5  ;;  %v770_v1 = vmul.f32 %v755_v42, %v1611_v6  ;;  %v803_v5 = vld [vmem:[%s1875_s6] sm:$0xff] }
 0x269   : > { %v767_v10 = vmul.f32 %v750_v38, %v1636_v18  ;;  %v808_v18 = vld [vmem:[%s1876_s7 + $0x8] sm:$0xff] }
 0x26a   : > { %835 = vmatpush.msra.mxu0 %v801_v44  ;;  %864 = vmatpush.msra.mxu1 %v802_v43 }
 0x26f   : > { %v760_v45 = vpop.permute.xlu0 %759  ;;  %v783_v49 = vpop.permute.xlu2 %782 }
 0x270   : > { %v771_v46 = vmul.f32 %v760_v45, %v1600_v2  ;;  %v772_v47 = vmul.f32 %v760_v45, %v1605_v4  ;;  %v768_v2 = vmul.f32 %v750_v38, %v1639_v19  ;;  %v797_v4 = vmul.f32 %v783_v49, %v1625_v13  ;;  %v807_v13 = vld [vmem:[%s1876_s7] sm:$0xff]  ;;  %v805_v19 = vld [vmem:[%s1875_s6 + $0x10] sm:$0xff] }
 0x271   : > { %v788_v48 = vpop.permute.xlu1 %787  ;;  %v798_v52 = vmul.f32 %v783_v49, %v1627_v14  ;;  %v804_v14 = vld [vmem:[%s1875_s6 + $0x8] sm:$0xff] }
 0x272   : > { %906 = vmatpush.msrb.mxu2 %v771_v46  ;;  %935 = vmatpush.msrb.mxu3 %v772_v47  ;;  %v799_v51 = vmul.f32 %v788_v48, %v1621_v11  ;;  %v800_v9 = vmul.f32 %v788_v48, %v1623_v12 }
 0x274   : > { %907 = vmatpush.msrb.mxu2 %v769_v0  ;;  %936 = vmatpush.msrb.mxu3 %v770_v1 }
 0x275   : > { %836 = vmatpush.msra.mxu0 %v799_v51  ;;  %865 = vmatpush.msra.mxu1 %v800_v9 }
 0x276   : > { %908 = vmatpush.msrb.mxu2 %v767_v10  ;;  %937 = vmatpush.msrb.mxu3 %v768_v2 }
 0x277   : > { %837 = vmatpush.msra.mxu0 %v797_v4  ;;  %866 = vmatpush.msra.mxu1 %v798_v52  ;;  %v958_v60 = vpop.permute.xlu0 %957  ;;  %v963_v24 = vpop.permute.xlu2 %962 }
 0x278   : > { %1152 = vmatmul.msk.f32.vlgmr.msrb.gmra.mxu2 %vm452_vm1, %v803_v5  ;;  %1156 = vmatmul.msk.f32.vlgmr.msrb.gmra.mxu3 %vm452_vm1, %v803_v5 }
 0x279   : > { %v778_v6 = vpop.permute.xlu1 %777 }
 0x27a   : > { %v795_v11 = vmul.f32 %v778_v6, %v1641_v20  ;;  %v796_v12 = vmul.f32 %v778_v6, %v1643_v21  ;;  %v809_v20 = vld [vmem:[%s1876_s7 + $0x10] sm:$0xff]  ;;  %v806_v21 = vld [vmem:[%s1875_s6 + $0x18] sm:$0xff] }
 0x27c   : > { %838 = vmatpush.msra.mxu0 %v795_v11  ;;  %867 = vmatpush.msra.mxu1 %v796_v12 }
 0x27d   : > { %1144 = vmatmul.msk.f32.vlgmr.msra.gmra.mxu0 %vm452_vm1, %v807_v13  ;;  %1148 = vmatmul.msk.f32.vlgmr.msra.gmra.mxu1 %vm452_vm1, %v807_v13 }
 0x27f   : > { %v973_v43 = vpop.permute.xlu0 %972 }
 0x280   : > { %1153 = vmatmul.msk.f32.gmra.mxu2 %vm452_vm1, %v804_v14  ;;  %1157 = vmatmul.msk.f32.gmra.mxu3 %vm452_vm1, %v804_v14 }
 0x281   : > { %v968_v34 = vpop.permute.xlu1 %967 }
 0x285   : > { %1145 = vmatmul.msk.f32.gmra.mxu0 %vm452_vm1, %v808_v18  ;;  %1149 = vmatmul.msk.f32.gmra.mxu1 %vm452_vm1, %v808_v18 }
 0x288   : > { %1154 = vmatmul.msk.f32.gmra.mxu2 %vm452_vm1, %v805_v19  ;;  %1158 = vmatmul.msk.f32.gmra.mxu3 %vm452_vm1, %v805_v19 }
 0x28d   : > { %1146 = vmatmul.msk.f32.gmra.mxu0 %vm452_vm1, %v809_v20  ;;  %1150 = vmatmul.msk.f32.gmra.mxu1 %vm452_vm1, %v809_v20 }
 0x290   : > { %1155 = vmatmul.msk.f32.gmra.mxu2 %vm452_vm1, %v806_v21  ;;  %1159 = vmatmul.msk.f32.gmra.mxu3 %vm452_vm1, %v806_v21 }
 0x295   : > { %1147 = vmatmul.msk.f32.gmra.mxu0 %vm452_vm1, %v810_v53  ;;  %1151 = vmatmul.msk.f32.gmra.mxu1 %vm452_vm1, %v810_v53 }
 0x2fa   : > { %v840_v50 = vpop.f32.mrf.mxu0  ;;  %v869_v54 = vpop.f32.mrf.mxu1 }
 0x2fb   : > { %v910_v55 = vpop.f32.mrf.mxu2  ;;  %v939_v56 = vpop.f32.mrf.mxu3 }
 0x2fc   : > { %v911_v57 = vadd.f32 %v910_v55, %v840_v50  ;;  %v940_v59 = vadd.f32 %v939_v56, %v869_v54 }
 0x2fe   : > { %v975_v61 = vadd.f32 %v958_v60, %v911_v57  ;;  %v976_v63 = vadd.f32 %v958_v60, %v940_v59 }
 0x300   : > { %v983_v3 = vmax.f32 %v975_v61, 0.0  ;;  %v984_v8 = vmax.f32 %v976_v63, 0.0 }
 0x302   : > { %991 = vst [vmem:[%s1825_s26] sm:$0xff] %v983_v3  ;;  %v843_v15 = vpop.f32.mrf.mxu0  ;;  %v872_v32 = vpop.f32.mrf.mxu1 }
 0x303   : > { %992 = vst [vmem:[%s1825_s26 + $0x8] sm:$0xff] %v984_v8  ;;  %v913_v17 = vpop.f32.mrf.mxu2  ;;  %v942_v22 = vpop.f32.mrf.mxu3 }
 0x304   : > { %v914_v23 = vadd.f32 %v913_v17, %v843_v15  ;;  %v943_v62 = vadd.f32 %v942_v22, %v872_v32 }
 0x306   : > { %v977_v25 = vadd.f32 %v963_v24, %v914_v23  ;;  %v978_v26 = vadd.f32 %v963_v24, %v943_v62 }
 0x308   : > { %v985_v27 = vmax.f32 %v977_v25, 0.0  ;;  %v986_v28 = vmax.f32 %v978_v26, 0.0 }
 0x30a   : > { %993 = vst [vmem:[%s1825_s26 + $0x10] sm:$0xff] %v985_v27  ;;  %v846_v58 = vpop.f32.mrf.mxu0  ;;  %v875_v29 = vpop.f32.mrf.mxu1 }
 0x30b   : > { %994 = vst [vmem:[%s1825_s26 + $0x18] sm:$0xff] %v986_v28  ;;  %v916_v30 = vpop.f32.mrf.mxu2  ;;  %v945_v16 = vpop.f32.mrf.mxu3 }
 0x30c   : > { %v917_v31 = vadd.f32 %v916_v30, %v846_v58  ;;  %v946_v33 = vadd.f32 %v945_v16, %v875_v29 }
 0x30e   : > { %v979_v35 = vadd.f32 %v968_v34, %v917_v31  ;;  %v980_v36 = vadd.f32 %v968_v34, %v946_v33 }
 0x310   : > { %v987_v37 = vmax.f32 %v979_v35, 0.0  ;;  %v988_v38 = vmax.f32 %v980_v36, 0.0 }
 0x312   : > { %995 = vst [vmem:[%s1825_s26 + $0x20] sm:$0xff] %v987_v37  ;;  %v849_v39 = vpop.f32.mrf.mxu0  ;;  %v878_v40 = vpop.f32.mrf.mxu1 }
 0x313   : > { %996 = vst [vmem:[%s1825_s26 + $0x28] sm:$0xff] %v988_v38  ;;  %v919_v41 = vpop.f32.mrf.mxu2  ;;  %v948_v7 = vpop.f32.mrf.mxu3 }
 0x314   : > { %v920_v42 = vadd.f32 %v919_v41, %v849_v39  ;;  %v949_v44 = vadd.f32 %v948_v7, %v878_v40 }
 0x316   : > { %v981_v45 = vadd.f32 %v973_v43, %v920_v42  ;;  %v982_v46 = vadd.f32 %v973_v43, %v949_v44 }
 0x318   : > { %v989_v47 = vmax.f32 %v981_v45, 0.0  ;;  %v990_v48 = vmax.f32 %v982_v46, 0.0 }
 0x31a   : > { %997 = vst [vmem:[%s1825_s26 + $0x30] sm:$0xff] %v989_v47 }
 0x31b   : > { %998 = vst [vmem:[%s1825_s26 + $0x38] sm:$0xff] %v990_v48 }
 0x31c   : > { %1351 = shalt.err (!%p1348_p0)
}
 0x31d   : > { %s1400_s0 = smov 256   ;;  %s1401_s18 = smov 16  }
 0x31e   : > { %1174 = dma.vmem_to_hbm [thread:$0]  (%p1502_p11), %s1013_s27, 1024, %s1015_s13, %s1000_s15, %s1400_s0, %s1400_s0, %s1401_s18  }
 0x31f PF: > { %s1909_s29 = sld [smem:[#allocation11_spill]]  ;;  %p1911_p1 = scmp.ge.s32.totalorder %s1394_s12, 2 }
 0x321   : > { %p1184_p4 = pnand %p1911_p1, %p1506_p12 }
 0x323   : > { %p1185_p7 = pneg %p1184_p4 }
 0x325   : > { %s1029_s26 = sand.u32 1, %s1909_s29  }
 0x326   : > { %s1030_s23 = scalar_lea.sflag [#allocation4], %s1029_s26 }
 0x327   : > { %1377 = dma.done.wait (%p1185_p7), %s1030_s23, 1024  }
 0x328   : > { %1379 = vsyncadd (%p1185_p7), %s1030_s23, 4294966272  ;;  %s1912_s12 = sld [smem:[#allocation13_spill]]  ;;  %s1915_s30 = smov %s1386_s10 }
 0x329   : > { %s1913_s11 = sld [smem:[#allocation12_spill]] }
 0x32a   : > { %s1914_s19 = sld [smem:[#allocation14_spill]] }
 0x32e   : > { %p25_p5 = scmp.ge.s32.totalorder %s1912_s12, 4  }
 0x32f   : > { %s1916_s10 = smov %s1913_s11 }
 0x330   : > { %s1917_s11 = smov %s1914_s19  ;;  %27 = sbr.rel (!%p25_p5) target bundleno = 9 (0x9), region = 114 }
 0x335   :  { %1036 = vsyncpa [#allocation3], 1 }
 0x336   :  { %1038 = vsyncpa [#allocation3 + $0x1], 1 }
 0x337   :  { %1039 = vsyncpa [#allocation6], 1 }
 0x338   :  { %1041 = vsyncpa [#allocation6 + $0x1], 1 }
 0x339   :  { %1042 = vsyncpa [#allocation4], 1 }
 0x33a   :  { %1044 = vsyncpa [#allocation4 + $0x1], 1 }

</bundles_post_ra>
